<compile_context>
chip_gen: v6e
topology: v6e:2x2x1
jax: 0.10.0
libtpu: 0.0.40
codegen_flags: <defaults>
</compile_context>

<pallas_src>
import functools

import jax
import jax.numpy as jnp
import numpy as np
from jax import lax
from jax.experimental import pallas as pl
from jax.experimental.pallas import tpu as pltpu

MIN_NORM = 1e-8
EPS_F32 = 1e-7          # manifold.eps[float32] in the reference implementation
MAX_NORM = 1000.0       # torch.renorm maxnorm used by manifold.normalize
MAX_TANGENT = 50.0      # clamp on tangent norm inside exp_map


# ---------------------------------------------------------------------------
# Kernel-side Lorentz math, transposed [D, M] layout (row 0 = "time" coord).
# ---------------------------------------------------------------------------
def _row0_mask(shape):
    return lax.broadcasted_iota(jnp.int32, shape, 0) == 0


def _exp_map_zero_t(dp, c, sqrt_c, row0):
    """manifold.exp_map_zero + manifold.normalize on [D, M] columns."""
    tail = jnp.where(row0, 0.0, dp)                                 # zero time row first
    lsq = jnp.sum(tail * tail, axis=0, keepdims=True)               # ||tangent tail||^2
    lsq_c = jnp.maximum(lsq + EPS_F32, 1e-6)
    lnorm = jnp.sqrt(lsq_c)
    inv_lnorm = lax.rsqrt(lsq_c)                                     # EUP rsqrt
    theta = jnp.minimum(lnorm, MAX_TANGENT) / sqrt_c
    e = jnp.exp(theta)
    sinh_t = 0.5 * (e - 1.0 / e)
    k = sqrt_c * sinh_t * inv_lnorm                                  # res_tail = k * tail
    # manifold.normalize: renorm tail (maxnorm=MAX_NORM), recompute time coordinate
    tail_sq = (k * k) * lsq
    tail_norm = jnp.sqrt(jnp.maximum(tail_sq, MIN_NORM))
    scale = jnp.where(tail_norm > MAX_NORM, MAX_NORM / tail_norm, 1.0)
    first = jnp.sqrt(c + (scale * scale) * tail_sq)
    return jnp.where(row0, first, (scale * k) * tail)


def _log_map_zero_t(y, sqrt_c, row0):
    y0 = y[0:1, :]
    z = jnp.maximum(y0 / sqrt_c + EPS_F32, 1.0 + EPS_F32)
    dist = sqrt_c * jnp.log(z + jnp.sqrt(z * z - 1.0))               # sqrt(c) * arcosh(.)
    tail = jnp.where(row0, 0.0, y)
    tmp_sq = jnp.sum(tail * tail, axis=0, keepdims=True)
    return (dist * lax.rsqrt(tmp_sq + EPS_F32)) * tail


def _ptransp_t(x, y, v, c):
    x0, y0, v0 = x[0:1, :], y[0:1, :], v[0:1, :]
    yv = jnp.sum(y * v, axis=0, keepdims=True) - 2.0 * y0 * v0       # Lorentz inner <y,v>
    xy = jnp.sum(x * y, axis=0, keepdims=True) - 2.0 * x0 * y0       # Lorentz inner <x,y>
    frac = yv / (c - xy)                                              # tiny epilogue op: exact
    return v + frac * (x + y)


def _lorentz_centroid_t(s, sqrt_c):
    s0 = s[0:1, :]
    inner = jnp.sum(s * s, axis=0, keepdims=True) - 2.0 * s0 * s0     # <s,s>_L
    return (sqrt_c * lax.rsqrt(jnp.maximum(jnp.abs(inner), MIN_NORM))) * s


# ---------------------------------------------------------------------------
# Pallas kernels.
# ---------------------------------------------------------------------------
def _expmap_kernel(sc_ref, x_ref, xh_ref):
    """Pass 1: x_h = exp_map_zero(x) for one large (D, TILE) node block."""
    c = sc_ref[0]
    sqrt_c = jnp.sqrt(c)
    row0 = _row0_mask(x_ref.shape)
    xh_ref[...] = _exp_map_zero_t(x_ref[...], c, sqrt_c, row0)


def _lgin_main_kernel(sc_ref, adj_ref, xhk_ref, xht_ref,
                      w1_ref, b1_ref, w2_ref, b2_ref, o_ref, acc_ref,
                      *, n_valid, tile_k, mask_k):
    """Pass 2: K-tiled Lorentz aggregation + GIN combine + 2-layer MLP per node tile.

    grid = (node tiles [parallel], contraction tiles [arbitrary]).
    """
    k = pl.program_id(1)

    @pl.when(k == 0)
    def _init():
        acc_ref[...] = jnp.zeros_like(acc_ref)

    # LorentzAgg (use_att=False): sum_x[:, tile] += x_h[:, kblk] @ adj[tile_rows, kblk]^T
    adj_blk = adj_ref[...]                          # (TILE_N, TILE_K) in native dtype: NO upcast
    lhs = xhk_ref[...]                              # (D, TILE_K) f32 (tiny)
    if lhs.dtype != adj_blk.dtype:
        lhs = lhs.astype(adj_blk.dtype)             # tiny cast; MXU rounds f32 to bf16 anyway
    if mask_k:                                      # static: only traced when N % TILE_K != 0
        col = k * tile_k + lax.broadcasted_iota(jnp.int32, adj_blk.shape, 1)
        adj_blk = jnp.where(col < n_valid, adj_blk, jnp.zeros_like(adj_blk))
        colk = k * tile_k + lax.broadcasted_iota(jnp.int32, lhs.shape, 1)
        lhs = jnp.where(colk < n_valid, lhs, jnp.zeros_like(lhs))
    acc_ref[...] += lax.dot_general(
        lhs, adj_blk,
        dimension_numbers=(((1,), (1,)), ((), ())),
        preferred_element_type=jnp.float32)         # lane-dense (D, TILE_N) MXU output

    # Epilogue: centroid + GIN combine (log maps, parallel transport, exp map) + GIN MLP.
    @pl.when(k == pl.num_programs(1) - 1)
    def _epilogue():
        c = sc_ref[0]
        eps = sc_ref[1]
        sqrt_c = jnp.sqrt(c)
        row0 = _row0_mask(xht_ref.shape)

        x_r = xht_ref[...]                                           # (D, TILE_N) hyperboloid pts
        agg = _lorentz_centroid_t(acc_ref[...], sqrt_c)

        log_out = _log_map_zero_t(agg, sqrt_c, row0)
        log_xr = _log_map_zero_t(x_r, sqrt_c, row0)
        pt_xr = _ptransp_t(x_r, agg, log_xr, c)
        out = _exp_map_zero_t(log_out + (1.0 + eps) * pt_xr, c, sqrt_c, row0)

        # GIN MLP (Linear -> ReLU -> Linear), transposed: y = W2^T.relu(W1^T.out + b1) + b2
        h = jnp.dot(w1_ref[...], out, preferred_element_type=jnp.float32) + b1_ref[...]
        h = jnp.maximum(h, 0.0)
        y = jnp.dot(w2_ref[...], h, preferred_element_type=jnp.float32) + b2_ref[...]
        o_ref[...] = y.astype(o_ref.dtype)                           # lane-dense store


# ---------------------------------------------------------------------------
# Wrapper: tile selection (generation-aware VMEM budget), two pallas_calls.
# ---------------------------------------------------------------------------
def lorentz_gin_forward(x, adj, eps, c, w1, b1, w2, b2):
    """x: [N, D] tangent features (time coord in column 0); adj: [N, N] dense adjacency in
    whatever dtype the caller provides (bf16 is exact for 0/1 and halves HBM traffic) --
    it is streamed through VMEM exactly once, with no wrapper-side copies.
    w1/b1/w2/b2: GIN MLP parameters in [in, out] layout."""
    n, d = x.shape
    h_dim = w1.shape[1]
    d_out = w2.shape[1]
    f32 = jnp.float32
    adj = jnp.asarray(adj)
    assert adj.shape == (n, n)

    # Generation-aware VMEM budget (v5e/v6e: 128 MiB, v7x: 64 MiB per TensorCore).
    try:
        vmem_cap = int(pltpu.get_tpu_info().vmem_capacity_bytes)
    except Exception:
        vmem_cap = 64 << 20                          # conservative (v7x) fallback
    vmem_limit = int(min(0.65 * vmem_cap, 100 << 20))

    # Node (output / lane) tile: keep >= 2 tiles so both v7x TensorCores get work.
    if n <= 256:
        tile_n = n
    elif n <= 512:
        tile_n = 256
    else:
        tile_n = 512
    # Contraction tile: bounds the streamed (TILE_N, TILE_K) adjacency block independent of N.
    adj_bytes = jnp.dtype(adj.dtype).itemsize
    if n <= 2048:
        tile_k = n
    else:
        budget = vmem_limit // 3                     # share for the adjacency double buffer
        tk = (budget // (2 * tile_n * adj_bytes)) // 128 * 128
        tile_k = int(max(512, min(tk, 8192)))
    num_n = -(-n // tile_n)
    num_k = -(-n // tile_k)
    mask_k = (n % tile_k) != 0

    # Layout plumbing on the TINY arrays only (D x N features, weights); adjacency untouched.
    x_t = jnp.asarray(x, f32).T                      # lane-dense [D, N]
    w1_t = jnp.asarray(w1, f32).T                    # (H, D)
    b1_t = jnp.asarray(b1, f32).reshape(h_dim, 1)
    w2_t = jnp.asarray(w2, f32).T                    # (D_OUT, H)
    b2_t = jnp.asarray(b2, f32).reshape(d_out, 1)
    scalars = jnp.asarray([c, eps], f32)

    smem = pl.BlockSpec(memory_space=pltpu.MemorySpace.SMEM)

    # Pass 1: x_h = exp_map_zero(x), one large lane-dense block per step.
    tile1 = n if n <= 8192 else 8192
    x_h_t = pl.pallas_call(
        _expmap_kernel,
        out_shape=jax.ShapeDtypeStruct((d, n), f32),
        grid=(-(-n // tile1),),
        in_specs=[smem, pl.BlockSpec((d, tile1), lambda i: (0, i))],
        out_specs=pl.BlockSpec((d, tile1), lambda i: (0, i)),
        compiler_params=pltpu.CompilerParams(
            dimension_semantics=("parallel",), vmem_limit_bytes=vmem_limit),
    )(scalars, x_t)

    # Pass 2: K-tiled aggregation + GIN combine + MLP, fused.  Adjacency streams
    # (TILE_N, TILE_K) blocks in its native dtype; weights stay VMEM-resident.
    # (If profiling shows exposed DMA on the adjacency stream, try
    #  pipeline_mode=pl.Buffered(3) on its BlockSpec.)
    kernel = functools.partial(_lgin_main_kernel, n_valid=n, tile_k=tile_k, mask_k=mask_k)
    out_t = pl.pallas_call(
        kernel,
        out_shape=jax.ShapeDtypeStruct((d_out, n), f32),
        grid=(num_n, num_k),                                         # reduction axis last
        in_specs=[
            smem,                                                    # [c, eps]
            pl.BlockSpec((tile_n, tile_k), lambda i, k: (i, k)),     # adj rows x contraction cols
            pl.BlockSpec((d, tile_k), lambda i, k: (0, k)),          # x_h contraction chunk (LHS)
            pl.BlockSpec((d, tile_n), lambda i, k: (0, i)),          # x_h node tile (= x_r)
            pl.BlockSpec((h_dim, d), lambda i, k: (0, 0)),           # W1^T (resident)
            pl.BlockSpec((h_dim, 1), lambda i, k: (0, 0)),           # b1
            pl.BlockSpec((d_out, h_dim), lambda i, k: (0, 0)),       # W2^T
            pl.BlockSpec((d_out, 1), lambda i, k: (0, 0)),           # b2
        ],
        out_specs=pl.BlockSpec((d_out, tile_n), lambda i, k: (0, i)),  # lane-dense output
        scratch_shapes=[pltpu.VMEM((d, tile_n), jnp.float32)],         # sum_x accumulator
        compiler_params=pltpu.CompilerParams(
            dimension_semantics=("parallel", "arbitrary"),
            vmem_limit_bytes=vmem_limit),
    )(scalars, adj, x_h_t, x_h_t, w1_t, b1_t, w2_t, b2_t)

    return out_t.T


# ---------------------------------------------------------------------------
# Pure-JAX reference (original [N, D] layout math, HIGHEST precision matmuls).
# ---------------------------------------------------------------------------
def _col0_mask(shape):
    return lax.broadcasted_iota(jnp.int32, shape, 1) == 0


def _time(x):
    return jnp.sum(jnp.where(_col0_mask(x.shape), x, 0.0), axis=-1, keepdims=True)


def _zero_time(x):
    return jnp.where(_col0_mask(x.shape), 0.0, x)


def _set_time(x, t):
    return jnp.where(_col0_mask(x.shape), t, x)


def _l_inner(x, y):
    return jnp.sum(x * y, axis=-1, keepdims=True) - 2.0 * (_time(x) * _time(y))


def _arcosh(z):
    z = jnp.maximum(z, 1.0 + EPS_F32)
    return jnp.log(z + jnp.sqrt(z * z - 1.0))


def _ref_exp_map_zero(dp, c):
    sqrt_c = jnp.sqrt(c)
    v = _zero_time(dp)
    lsq = jnp.sum(v * v, axis=-1, keepdims=True)
    lnorm = jnp.sqrt(jnp.maximum(lsq + EPS_F32, 1e-6))
    theta = jnp.minimum(lnorm, MAX_TANGENT) / sqrt_c
    res_tail = sqrt_c * jnp.sinh(theta) * v / lnorm
    res = _set_time(res_tail, sqrt_c * jnp.cosh(theta))
    tail = _zero_time(res)
    tail_norm = jnp.sqrt(jnp.maximum(jnp.sum(tail * tail, -1, keepdims=True), MIN_NORM))
    scale = jnp.where(tail_norm > MAX_NORM, MAX_NORM / tail_norm, 1.0)
    tail = tail * scale
    first = jnp.sqrt(c + jnp.sum(tail * tail, -1, keepdims=True))
    return _set_time(tail, first)


def _ref_log_map_zero(y, c):
    sqrt_c = jnp.sqrt(c)
    dist = sqrt_c * _arcosh(_time(y) / sqrt_c + EPS_F32)
    tmp = _zero_time(y)
    tmp_norm = jnp.sqrt(jnp.sum(tmp * tmp, -1, keepdims=True) + EPS_F32)
    return dist / tmp_norm * tmp


def _ref_ptransp(x, y, v, c):
    frac = _l_inner(y, v) / (c - _l_inner(x, y))
    return v + frac * (x + y)


def _ref_lorentz_centroid(sum_x, c):
    inner = _l_inner(sum_x, sum_x)
    return jnp.sqrt(c) / jnp.sqrt(jnp.maximum(jnp.abs(inner), MIN_NORM)) * sum_x


def lgin_reference(x, adj, eps, c, w1, b1, w2, b2):
    hi = jax.lax.Precision.HIGHEST
    x = x.astype(jnp.float32)
    adj = adj.astype(jnp.float32)
    x_h = _ref_exp_map_zero(x, c)
    agg = _ref_lorentz_centroid(jnp.dot(adj, x_h, precision=hi), c)
    log_out = _ref_log_map_zero(agg, c)
    log_xr = _ref_log_map_zero(x_h, c)
    pt_xr = _ref_ptransp(x_h, agg, log_xr, c)
    out = _ref_exp_map_zero(log_out + (1.0 + eps) * pt_xr, c)
    h = jnp.maximum(jnp.dot(out, w1, precision=hi) + b1, 0.0)
    return jnp.dot(h, w2, precision=hi) + b2


if __name__ == "__main__":
    # Small deterministic problem: N nodes, in_features = 7 -> D = in_features + 1 = 8
    N, D, H, D_OUT = 512, 8, 32, 8
    c_in = 1.0
    eps_gin = 0.1   # the learnable GIN epsilon Parameter

    key = jax.random.PRNGKey(0)
    kx, ka, k1, k2 = jax.random.split(key, 4)

    x = 0.5 * jax.random.normal(kx, (N, D), dtype=jnp.float32)
    # dense symmetric 0/1 adjacency with self loops (stands in for the sparse COO tensor)
    a = (jax.random.uniform(ka, (N, N)) < 0.05).astype(jnp.float32)
    adj_f32 = jnp.clip(a + a.T + jnp.eye(N, dtype=jnp.float32), 0.0, 1.0)
    # bf16 adjacency is exact for 0/1 entries and halves the dominant HBM stream; the
    # kernel accepts any dtype and never copies / casts the N x N array on the host side.
    adj = adj_f32.astype(jnp.bfloat16)

    # GIN MLP parameters (deterministic init; [in, out] layout)
    w1 = jax.random.normal(k1, (D, H), dtype=jnp.float32) * (1.0 / np.sqrt(D))
    b1 = jnp.zeros((H,), dtype=jnp.float32)
    w2 = jax.random.normal(k2, (H, D_OUT), dtype=jnp.float32) * (1.0 / np.sqrt(H))
    b2 = jnp.zeros((D_OUT,), dtype=jnp.float32)

    out = jax.block_until_ready(
        lorentz_gin_forward(x, adj, eps_gin, c_in, w1, b1, w2, b2))
    ref = jax.block_until_ready(
        lgin_reference(x, adj_f32, eps_gin, c_in, w1, b1, w2, b2))

    # tolerance absorbs default-precision MXU (bf16 operand rounding) vs HIGHEST reference
    np.testing.assert_allclose(np.asarray(out), np.asarray(ref), rtol=1e-2, atol=1e-2)

    print("KERNEL_OK")
</pallas_src>

<mosaic_0001>
module attributes {stable_mosaic.version = 11 : i64} {
  func.func @_expmap_kernel(%arg0: i32, %arg1: memref<2xf32, #tpu.memory_space<smem>>, %arg2: memref<8x512xf32, #tpu.memory_space<vmem>>, %arg3: memref<8x512xf32, #tpu.memory_space<vmem>>) attributes {dimension_semantics = [#tpu.dimension_semantics<parallel>], iteration_bounds = array<i64: 1>, scalar_prefetch = 0 : i64, scratch_operands = 0 : i64, tpu.core_type = #tpu.core_type<tc>, window_params = [{transform_indices = @transform_0, window_bounds = array<i64: 2>}, {transform_indices = @transform_1, window_bounds = array<i64: 8, 512>}, {transform_indices = @transform_2, window_bounds = array<i64: 8, 512>}]} {
    %c0 = arith.constant 0 : index
    %0 = memref.load %arg1[%c0] : memref<2xf32, #tpu.memory_space<smem>>
    %1 = math.sqrt %0 : f32
    %2 = tpu.iota {dimensions = array<i32: 0>} : vector<8x512xi32>
    %c0_i32 = arith.constant 0 : i32
    %3 = vector.broadcast %c0_i32 : i32 to vector<8x512xi32>
    %4 = arith.cmpi eq, %2, %3 : vector<8x512xi32>
    %c0_0 = arith.constant 0 : index
    %c0_1 = arith.constant 0 : index
    %5 = vector.load %arg2[%c0_0, %c0_1] : memref<8x512xf32, #tpu.memory_space<vmem>>, vector<8x512xf32>
    %cst = arith.constant 0.000000e+00 : f32
    %6 = vector.broadcast %cst : f32 to vector<8x512xf32>
    %7 = arith.select %4, %6, %5 : vector<8x512xi1>, vector<8x512xf32>
    %8 = arith.mulf %7, %7 : vector<8x512xf32>
    %cst_2 = arith.constant dense<0.000000e+00> : vector<512xf32>
    %9 = vector.multi_reduction <add>, %8, %cst_2 [0] : vector<8x512xf32> to vector<512xf32>
    %10 = vector.shape_cast %9 : vector<512xf32> to vector<1x512xf32>
    %cst_3 = arith.constant 1.000000e-07 : f32
    %11 = vector.broadcast %cst_3 : f32 to vector<1x512xf32>
    %12 = arith.addf %10, %11 : vector<1x512xf32>
    %cst_4 = arith.constant 9.99999997E-7 : f32
    %13 = vector.broadcast %cst_4 : f32 to vector<1x512xf32>
    %14 = arith.maximumf %12, %13 : vector<1x512xf32>
    %15 = math.sqrt %14 : vector<1x512xf32>
    %16 = math.rsqrt %14 : vector<1x512xf32>
    %cst_5 = arith.constant 5.000000e+01 : f32
    %17 = vector.broadcast %cst_5 : f32 to vector<1x512xf32>
    %18 = arith.minimumf %15, %17 : vector<1x512xf32>
    %19 = vector.broadcast %1 : f32 to vector<1x512xf32>
    %20 = arith.divf %18, %19 : vector<1x512xf32>
    %21 = math.exp %20 : vector<1x512xf32>
    %cst_6 = arith.constant 1.000000e+00 : f32
    %22 = vector.broadcast %cst_6 : f32 to vector<1x512xf32>
    %23 = arith.divf %22, %21 : vector<1x512xf32>
    %24 = arith.subf %21, %23 : vector<1x512xf32>
    %cst_7 = arith.constant 5.000000e-01 : f32
    %25 = vector.broadcast %cst_7 : f32 to vector<1x512xf32>
    %26 = arith.mulf %25, %24 : vector<1x512xf32>
    %27 = vector.broadcast %1 : f32 to vector<1x512xf32>
    %28 = arith.mulf %27, %26 : vector<1x512xf32>
    %29 = arith.mulf %28, %16 : vector<1x512xf32>
    %30 = arith.mulf %29, %29 : vector<1x512xf32>
    %31 = arith.mulf %30, %10 : vector<1x512xf32>
    %cst_8 = arith.constant 9.99999993E-9 : f32
    %32 = vector.broadcast %cst_8 : f32 to vector<1x512xf32>
    %33 = arith.maximumf %31, %32 : vector<1x512xf32>
    %34 = math.sqrt %33 : vector<1x512xf32>
    %cst_9 = arith.constant 1.000000e+03 : f32
    %35 = vector.broadcast %cst_9 : f32 to vector<1x512xf32>
    %36 = arith.cmpf ogt, %34, %35 : vector<1x512xf32>
    %cst_10 = arith.constant 1.000000e+03 : f32
    %37 = vector.broadcast %cst_10 : f32 to vector<1x512xf32>
    %38 = arith.divf %37, %34 : vector<1x512xf32>
    %cst_11 = arith.constant 1.000000e+00 : f32
    %39 = vector.broadcast %cst_11 : f32 to vector<1x512xf32>
    %40 = arith.select %36, %38, %39 : vector<1x512xi1>, vector<1x512xf32>
    %41 = arith.mulf %40, %40 : vector<1x512xf32>
    %42 = arith.mulf %41, %31 : vector<1x512xf32>
    %43 = vector.broadcast %0 : f32 to vector<1x512xf32>
    %44 = arith.addf %43, %42 : vector<1x512xf32>
    %45 = math.sqrt %44 : vector<1x512xf32>
    %46 = arith.mulf %40, %29 : vector<1x512xf32>
    %47 = vector.broadcast %46 : vector<1x512xf32> to vector<8x512xf32>
    %48 = arith.mulf %47, %7 : vector<8x512xf32>
    %49 = vector.shape_cast %45 : vector<1x512xf32> to vector<1x512xf32>
    %50 = vector.broadcast %49 : vector<1x512xf32> to vector<8x512xf32>
    %51 = arith.select %4, %50, %48 : vector<8x512xi1>, vector<8x512xf32>
    %c0_12 = arith.constant 0 : index
    %c0_13 = arith.constant 0 : index
    %52 = vector.load %arg3[%c0_12, %c0_13] : memref<8x512xf32, #tpu.memory_space<vmem>>, vector<8x512xf32>
    tpu.vector_store %arg3[%c0_12, %c0_13], %51 {strides = array<i32>} : memref<8x512xf32, #tpu.memory_space<vmem>>, vector<8x512xf32>,
    return
  }
  func.func @transform_0(%arg0: i32) -> i32 {
    %c0_i32 = arith.constant 0 : i32
    %c0_i32_0 = arith.constant 0 : i32
    return %c0_i32 : i32
  }
  func.func @transform_1(%arg0: i32) -> (i32, i32) {
    %c0_i32 = arith.constant 0 : i32
    %c0_i32_0 = arith.constant 0 : i32
    return %c0_i32, %arg0 : i32, i32
  }
  func.func @transform_2(%arg0: i32) -> (i32, i32) {
    %c0_i32 = arith.constant 0 : i32
    %c0_i32_0 = arith.constant 0 : i32
    return %c0_i32, %arg0 : i32, i32
  }
}

</mosaic_0001>

<bundles_post_ra>
// kernel: tpu_custom_call.1
= control target key start
LH: loop header
LB: loop body
LE: loop exit
PB: predicated region body
PF: predicated region fallthrough
CT: control target
= control target key end

     0   :  { %7 = vsyncpa [#allocation5], 0  ;;  %s559_s0 = inlined_call_operand.hbm [shape: f32[2], index: 0, kind: input, shape index: {}]   ;;  %s560_s1 = inlined_call_operand.hbm [shape: f32[8,512], index: 1, kind: input, shape index: {}]   ;;  %s561_s2 = inlined_call_operand.hbm [shape: f32[8,512], index: 2, kind: output, shape index: {}]  }
   0x1   :  { %8 = vsyncpa [#allocation3], 0 }
   0x2   :  { %9 = vsyncpa [#allocation4], 0  ;;  %s406_s9 = smov [#allocation2]   ;;  %s407_s12 = smov [#allocation6]  }
   0x3   :  { %17 = dma.hbm_to_smem %s559_s0, 16, %s406_s9, [#allocation5]  }
   0x4   :  { %s24_s13 = sshll.u32 %s407_s12, 4  ;;  %s25_s13 = int_to_ptr.vmem [resolvable:$true] %s24_s13 }
   0x5   :  { %s368_s14 = scalar_lea.vmem %s25_s13, 512  ;;  %p373_p1 = scmp.lt.s32.totalorder %s25_s13, %s25_s13 }
   0x6   :  { %p369_p0 = scmp.ne.s32.totalorder %s25_s13, %s368_s14  ;;  %p374_p2 = scmp.lt.s32.totalorder %s368_s14, %s368_s14 }
   0x8   :  { %p375_p3 = por %p374_p2, %p373_p1 }
   0xa   :  { %p376_p4 = pnand %p375_p3, %p369_p0 }
   0xc   :  { %379 = shalt.err (!%p376_p4)
}
   0xd   :  { %27 = dma.hbm_to_vmem [thread:$0]  %s560_s1, 512, %s25_s13, [#allocation3]  }
   0xe   :  { %400 = dma.done.wait [#allocation5], 16  }
   0xf   :  { %401 = vsyncadd [#allocation5], 4294967280 }
  0x10   :  { %402 = dma.done.wait [#allocation3], 512  }
  0x11   :  { %403 = vsyncadd [#allocation3], 4294966784 }
  0x12   :  { %34 = sfence }
  0x13   :  { %s35_s0 = sld [smem:[#allocation2]]  ;;  %v45_v1 = vlaneseq  ;;  %v48_v3 = vld [vmem:[#allocation6] sm:$0xff]  ;;  %v49_v4 = vld [vmem:[#allocation6 + $0x8] sm:$0xff]  ;;  %v50_v5 = vld [vmem:[#allocation6 + $0x10] sm:$0xff]  ;;  %s408_s17 = smov [#allocation7]  }
  0x14   :  { %v51_v6 = vld [vmem:[#allocation6 + $0x18] sm:$0xff]  ;;  %s285_s18 = sshll.u32 %s408_s17, 4  ;;  %s286_s18 = int_to_ptr.vmem [resolvable:$true] %s285_s18 }
  0x15   :  { %v433_v2 = vshrl.u32 %v45_v1, 7  ;;  %s380_s19 = scalar_lea.vmem %s286_s18, 512  ;;  %p385_p6 = scmp.lt.s32.totalorder %s286_s18, %s286_s18 }
  0x16   :  { %p381_p5 = scmp.ne.s32.totalorder %s286_s18, %s380_s19  ;;  %p386_p7 = scmp.lt.s32.totalorder %s380_s19, %s380_s19 }
  0x17   :  { %vm47_vm0 = vcmp.eq.s32.totalorder %v433_v2, 0 }
  0x18   :  { %v438_v7 = vsel %vm47_vm0, 0.0, %v48_v3  ;;  %v442_v8 = vsel %vm47_vm0, 0.0, %v49_v4  ;;  %v448_v11 = vsel %vm47_vm0, 0.0, %v50_v5  ;;  %v454_v13 = vsel %vm47_vm0, 0.0, %v51_v6  ;;  %p387_p8 = por %p386_p7, %p385_p6 }
  0x19   :  { %v430_v0 = vstv %s35_s0  ;;  %v56_v14 = vmul.f32 %v438_v7, %v438_v7  ;;  %v57_v15 = vmul.f32 %v442_v8, %v442_v8  ;;  %v58_v17 = vmul.f32 %v448_v11, %v448_v11 }
  0x1a   :  { %300 = vrsqrt.f32 %v430_v0  ;;  %vm39_vm1 = vcmp.eq.f32.partialorder %v430_v0, inf  ;;  %v42_v10 = vand.u32 2147483648, %v430_v0  ;;  %vm41_vm2 = vcmp.eq.f32.partialorder %v430_v0, 0.0  ;;  %p388_p9 = pnand %p387_p8, %p381_p5 }
  0x1b   :  { %v59_v19 = vmul.f32 %v454_v13, %v454_v13  ;;  %v60_v20 = vrot.slane %v56_v14, 4  ;;  %v66_v21 = vrot.slane %v57_v15, 4  ;;  %v72_v22 = vrot.slane %v58_v17, 4 }
  0x1d   :  { %v78_v23 = vrot.slane %v59_v19, 4  ;;  %v61_v24 = vadd.f32 %v60_v20, %v56_v14  ;;  %v67_v25 = vadd.f32 %v66_v21, %v57_v15  ;;  %v73_v26 = vadd.f32 %v72_v22, %v58_v17 }
  0x1f   :  { %v79_v27 = vadd.f32 %v78_v23, %v59_v19  ;;  %v62_v28 = vrot.slane %v61_v24, 2  ;;  %v68_v29 = vrot.slane %v67_v25, 2  ;;  %v74_v30 = vrot.slane %v73_v26, 2 }
  0x21   :  { %v80_v31 = vrot.slane %v79_v27, 2  ;;  %v63_v32 = vadd.f32 %v62_v28, %v61_v24  ;;  %v69_v33 = vadd.f32 %v68_v29, %v67_v25  ;;  %v75_v34 = vadd.f32 %v74_v30, %v73_v26 }
  0x23   :  { %v81_v35 = vadd.f32 %v80_v31, %v79_v27  ;;  %v64_v36 = vrot.slane %v63_v32, 1  ;;  %v70_v37 = vrot.slane %v69_v33, 1  ;;  %v76_v38 = vrot.slane %v75_v34, 1 }
  0x25   :  { %v82_v39 = vrot.slane %v81_v35, 1  ;;  %v465_v40 = vadd.f32 %v64_v36, %v63_v32  ;;  %v467_v41 = vadd.f32 %v70_v37, %v69_v33  ;;  %v469_v42 = vadd.f32 %v76_v38, %v75_v34 }
  0x27   :  { %v301_v9 = vpop.eup %300  ;;  %v471_v43 = vadd.f32 %v82_v39, %v81_v35  ;;  %v84_v44 = vadd.f32 1e-07, %v465_v40  ;;  %v85_v45 = vadd.f32 1e-07, %v467_v41  ;;  %v86_v46 = vadd.f32 1e-07, %v469_v42 }
  0x28   :  { %v38_v12 = vmul.f32 %v301_v9, %v430_v0 }
  0x29   :  { %v87_v47 = vadd.f32 1e-07, %v471_v43  ;;  %v88_v48 = vmax.f32 %v84_v44, 1e-06  ;;  %v89_v49 = vmax.f32 %v85_v45, 1e-06 }
  0x2a   :  { %v40_v16 = vsel %vm39_vm1, %v430_v0, %v38_v12  ;;  %v90_v50 = vmax.f32 %v86_v46, 1e-06 }
  0x2b   :  { %v43_v18 = vsel %vm41_vm2, %v42_v10, %v40_v16  ;;  %v91_v51 = vmax.f32 %v87_v47, 1e-06  ;;  %302 = vrsqrt.f32 %v88_v48  ;;  %vm94_vm3 = vcmp.eq.f32.partialorder %v88_v48, inf }
  0x2c   :  { %295 = vpush %v43_v18  ;;  %304 = vrsqrt.f32 %v89_v49  ;;  %vm101_vm4 = vcmp.eq.f32.partialorder %v89_v49, inf  ;;  %vm108_vm5 = vcmp.eq.f32.partialorder %v90_v50, inf  ;;  %vm96_vm7 = vcmp.eq.f32.partialorder %v88_v48, 0.0 }
  0x2d   :  { %306 = vrsqrt.f32 %v90_v50  ;;  %vm115_vm6 = vcmp.eq.f32.partialorder %v91_v51, inf  ;;  %v97_v61 = vand.u32 2147483648, %v88_v48  ;;  %vm103_vm8 = vcmp.eq.f32.partialorder %v89_v49, 0.0 }
  0x2e   :  { %308 = vrsqrt.f32 %v91_v51  ;;  %v104_v62 = vand.u32 2147483648, %v89_v49  ;;  %vm110_vm9 = vcmp.eq.f32.partialorder %v90_v50, 0.0  ;;  %v111_v63 = vand.u32 2147483648, %v90_v50 }
  0x2f   :  { %vm117_vm10 = vcmp.eq.f32.partialorder %v91_v51, 0.0  ;;  %v118_v1 = vand.u32 2147483648, %v91_v51 }
  0x38   :  { %v477_v52 = vpop.eup %302 }
  0x39   :  { %v479_v53 = vpop.eup %304  ;;  %v93_v56 = vmul.f32 %v477_v52, %v88_v48 }
  0x3a   :  { %v481_v54 = vpop.eup %306  ;;  %v100_v58 = vmul.f32 %v479_v53, %v89_v49 }
  0x3b   :  { %v483_v55 = vpop.eup %308  ;;  %v107_v59 = vmul.f32 %v481_v54, %v90_v50  ;;  %v95_v3 = vsel %vm94_vm3, %v88_v48, %v93_v56 }
  0x3c   :  { %v114_v60 = vmul.f32 %v483_v55, %v91_v51  ;;  %v102_v4 = vsel %vm101_vm4, %v89_v49, %v100_v58  ;;  %v98_v9 = vsel %vm96_vm7, %v97_v61, %v95_v3 }
  0x3d   :  { %v109_v5 = vsel %vm108_vm5, %v90_v50, %v107_v59  ;;  %v105_v10 = vsel %vm103_vm8, %v104_v62, %v102_v4  ;;  %v124_v15 = vmin.f32 %v98_v9, 50.0 }
  0x3e   :  { %v116_v6 = vsel %vm115_vm6, %v91_v51, %v114_v60  ;;  %v112_v12 = vsel %vm110_vm9, %v111_v63, %v109_v5  ;;  %v125_v16 = vmin.f32 %v105_v10, 50.0 }
  0x3f   :  { %v119_v14 = vsel %vm117_vm10, %v118_v1, %v116_v6  ;;  %v126_v17 = vmin.f32 %v112_v12, 50.0 }
  0x40   :  { %v127_v18 = vmin.f32 %v119_v14, 50.0 }
  0x5d   :  { %s296_s1 = spop %295 }
  0x5e   :  { %v486_v57 = vstv %s296_s1 }
  0x5f   :  { %310 = vrcp.f32 %v486_v57 }
  0x6c   :  { %v311_v19 = vpop.eup %310 }
  0x6d   :  { %v130_v20 = vmul.f32 %v311_v19, %v124_v15  ;;  %v131_v21 = vmul.f32 %v311_v19, %v125_v16  ;;  %v132_v22 = vmul.f32 %v311_v19, %v126_v17  ;;  %v133_v23 = vmul.f32 %v311_v19, %v127_v18 }
  0x6f   :  { %v134_v24 = vmul.f32 1.442695, %v130_v20  ;;  %v136_v25 = vmul.f32 1.442695, %v131_v21  ;;  %v138_v26 = vmul.f32 1.442695, %v132_v22 }
  0x70   :  { %v140_v27 = vmul.f32 1.442695, %v133_v23 }
  0x71   :  { %312 = vpow2.f32 %v134_v24 }
  0x72   :  { %314 = vpow2.f32 %v136_v25 }
  0x73   :  { %316 = vpow2.f32 %v138_v26 }
  0x74   :  { %318 = vpow2.f32 %v140_v27 }
  0x7e   :  { %v313_v28 = vpop.eup %312 }
  0x7f   :  { %v315_v29 = vpop.eup %314  ;;  %320 = vrcp.f32 %v313_v28 }
  0x80   :  { %v317_v30 = vpop.eup %316  ;;  %322 = vrcp.f32 %v315_v29 }
  0x81   :  { %v319_v31 = vpop.eup %318  ;;  %324 = vrcp.f32 %v317_v30 }
  0x82   :  { %326 = vrcp.f32 %v319_v31 }
  0x8c   :  { %v321_v32 = vpop.eup %320 }
  0x8d   :  { %v323_v33 = vpop.eup %322  ;;  %v150_v34 = vsub.f32 %v313_v28, %v321_v32 }
  0x8e   :  { %v325_v35 = vpop.eup %324  ;;  %v151_v36 = vsub.f32 %v315_v29, %v323_v33 }
  0x8f   :  { %v327_v37 = vpop.eup %326  ;;  %v152_v38 = vsub.f32 %v317_v30, %v325_v35  ;;  %v154_v39 = vmul.f32 0.5, %v150_v34 }
  0x90   :  { %v153_v44 = vsub.f32 %v319_v31, %v327_v37  ;;  %v155_v45 = vmul.f32 0.5, %v151_v36 }
  0x91   :  { %v156_v46 = vmul.f32 0.5, %v152_v38  ;;  %v158_v47 = vmul.f32 %v154_v39, %v486_v57 }
  0x92   :  { %v157_v48 = vmul.f32 0.5, %v153_v44  ;;  %v159_v49 = vmul.f32 %v155_v45, %v486_v57 }
  0x93   :  { %v160_v50 = vmul.f32 %v156_v46, %v486_v57  ;;  %v496_v51 = vmul.f32 %v477_v52, %v158_v47 }
  0x94   :  { %v161_v56 = vmul.f32 %v157_v48, %v486_v57  ;;  %v500_v58 = vmul.f32 %v479_v53, %v159_v49 }
  0x95   :  { %v503_v59 = vmul.f32 %v481_v54, %v160_v50  ;;  %v166_v60 = vmul.f32 %v496_v51, %v496_v51 }
  0x96   :  { %v508_v61 = vmul.f32 %v483_v55, %v161_v56  ;;  %v167_v62 = vmul.f32 %v500_v58, %v500_v58 }
  0x97   :  { %v168_v52 = vmul.f32 %v503_v59, %v503_v59  ;;  %v515_v57 = vmul.f32 %v166_v60, %v465_v40 }
  0x98   :  { %v169_v53 = vmul.f32 %v508_v61, %v508_v61  ;;  %v520_v54 = vmul.f32 %v167_v62, %v467_v41 }
  0x99   :  { %v523_v63 = vmul.f32 %v168_v52, %v469_v42  ;;  %v174_v55 = vmax.f32 %v515_v57, 1e-08 }
  0x9a   :  { %v527_v1 = vmul.f32 %v169_v53, %v471_v43  ;;  %v175_v3 = vmax.f32 %v520_v54, 1e-08 }
  0x9b   :  { %v176_v4 = vmax.f32 %v523_v63, 1e-08  ;;  %328 = vrsqrt.f32 %v174_v55  ;;  %vm180_vm11 = vcmp.eq.f32.partialorder %v174_v55, inf  ;;  %vm182_vm12 = vcmp.eq.f32.partialorder %v174_v55, 0.0 }
  0x9c   :  { %v177_v40 = vmax.f32 %v527_v1, 1e-08  ;;  %330 = vrsqrt.f32 %v175_v3  ;;  %v183_v6 = vand.u32 2147483648, %v174_v55  ;;  %vm187_vm13 = vcmp.eq.f32.partialorder %v175_v3, inf }
  0x9d   :  { %332 = vrsqrt.f32 %v176_v4  ;;  %vm189_vm14 = vcmp.eq.f32.partialorder %v175_v3, 0.0  ;;  %v190_v10 = vand.u32 2147483648, %v175_v3  ;;  %vm194_vm15 = vcmp.eq.f32.partialorder %v176_v4, inf }
  0x9e   :  { %334 = vrsqrt.f32 %v177_v40  ;;  %vm196_vm1 = vcmp.eq.f32.partialorder %v176_v4, 0.0  ;;  %v197_v16 = vand.u32 2147483648, %v176_v4  ;;  %vm201_vm2 = vcmp.eq.f32.partialorder %v177_v40, inf }
  0x9f   :  { %v204_v22 = vand.u32 2147483648, %v177_v40  ;;  %vm203_vm3 = vcmp.eq.f32.partialorder %v177_v40, 0.0 }
  0xa8   :  { %v329_v41 = vpop.eup %328 }
  0xa9   :  { %v331_v5 = vpop.eup %330  ;;  %v179_v42 = vmul.f32 %v329_v41, %v174_v55 }
  0xaa   :  { %v333_v9 = vpop.eup %332  ;;  %v186_v43 = vmul.f32 %v331_v5, %v175_v3 }
  0xab   :  { %v335_v12 = vpop.eup %334  ;;  %v181_v14 = vsel %vm180_vm11, %v174_v55, %v179_v42  ;;  %v193_v15 = vmul.f32 %v333_v9, %v176_v4 }
  0xac   :  { %v184_v17 = vsel %vm182_vm12, %v183_v6, %v181_v14  ;;  %v188_v18 = vsel %vm187_vm13, %v175_v3, %v186_v43  ;;  %v200_v19 = vmul.f32 %v335_v12, %v177_v40 }
  0xad   :  { %v191_v20 = vsel %vm189_vm14, %v190_v10, %v188_v18  ;;  %v195_v21 = vsel %vm194_vm15, %v176_v4, %v193_v15  ;;  %336 = vrcp.f32 %v184_v17  ;;  %vm206_vm4 = vcmp.gt.f32.partialorder %v184_v17, 1000.0 }
  0xae   :  { %v198_v23 = vsel %vm196_vm1, %v197_v16, %v195_v21  ;;  %v202_v24 = vsel %vm201_vm2, %v177_v40, %v200_v19  ;;  %338 = vrcp.f32 %v191_v20  ;;  %vm207_vm5 = vcmp.gt.f32.partialorder %v191_v20, 1000.0 }
  0xaf   :  { %v205_v25 = vsel %vm203_vm3, %v204_v22, %v202_v24  ;;  %340 = vrcp.f32 %v198_v23  ;;  %vm208_vm6 = vcmp.gt.f32.partialorder %v198_v23, 1000.0 }
  0xb0   :  { %342 = vrcp.f32 %v205_v25  ;;  %vm209_vm7 = vcmp.gt.f32.partialorder %v205_v25, 1000.0 }
  0xba   :  { %v337_v26 = vpop.eup %336 }
  0xbb   :  { %v339_v27 = vpop.eup %338  ;;  %v211_v28 = vmul.f32 1000.0, %v337_v26 }
  0xbc   :  { %v341_v29 = vpop.eup %340  ;;  %v213_v30 = vmul.f32 1000.0, %v339_v27 }
  0xbd   :  { %v343_v31 = vpop.eup %342  ;;  %v215_v32 = vmul.f32 1000.0, %v341_v29  ;;  %v218_v33 = vsel %vm206_vm4, %v211_v28, 1.0 }
  0xbe   :  { %v217_v34 = vmul.f32 1000.0, %v343_v31  ;;  %v219_v35 = vsel %vm207_vm5, %v213_v30, 1.0  ;;  %v222_v36 = vmul.f32 %v218_v33, %v218_v33  ;;  %v263_v52 = vmul.f32 %v218_v33, %v496_v51 }
  0xbf   :  { %v220_v37 = vsel %vm208_vm6, %v215_v32, 1.0  ;;  %v223_v38 = vmul.f32 %v219_v35, %v219_v35 }
  0xc0   :  { %v221_v39 = vsel %vm209_vm7, %v217_v34, 1.0  ;;  %v224_v44 = vmul.f32 %v220_v37, %v220_v37  ;;  %v226_v45 = vmul.f32 %v222_v36, %v515_v57  ;;  %v264_v57 = vmul.f32 %v219_v35, %v500_v58 }
  0xc1   :  { %v225_v46 = vmul.f32 %v221_v39, %v221_v39  ;;  %v227_v47 = vmul.f32 %v223_v38, %v520_v54  ;;  %v265_v53 = vmul.f32 %v220_v37, %v503_v59  ;;  %v266_v54 = vmul.f32 %v221_v39, %v508_v61 }
  0xc2   :  { %v228_v48 = vmul.f32 %v224_v44, %v523_v63  ;;  %v231_v49 = vadd.f32 %v226_v45, %v430_v0  ;;  %v267_v63 = vmul.f32 %v263_v52, %v438_v7 }
  0xc3   :  { %v229_v50 = vmul.f32 %v225_v46, %v527_v1  ;;  %v232_v56 = vadd.f32 %v227_v47, %v430_v0  ;;  %v268_v1 = vmul.f32 %v264_v57, %v442_v8  ;;  %v269_v3 = vmul.f32 %v265_v53, %v448_v11 }
  0xc4   :  { %v233_v60 = vadd.f32 %v228_v48, %v430_v0  ;;  %344 = vrsqrt.f32 %v231_v49  ;;  %vm237_vm8 = vcmp.eq.f32.partialorder %v231_v49, inf  ;;  %vm239_vm9 = vcmp.eq.f32.partialorder %v231_v49, 0.0 }
  0xc5   :  { %v234_v62 = vadd.f32 %v229_v50, %v430_v0  ;;  %346 = vrsqrt.f32 %v232_v56  ;;  %v270_v0 = vmul.f32 %v266_v54, %v454_v13  ;;  %v240_v51 = vand.u32 2147483648, %v231_v49 }
  0xc6   :  { %348 = vrsqrt.f32 %v233_v60  ;;  %vm244_vm10 = vcmp.eq.f32.partialorder %v232_v56, inf  ;;  %vm246_vm11 = vcmp.eq.f32.partialorder %v232_v56, 0.0  ;;  %v247_v59 = vand.u32 2147483648, %v232_v56 }
  0xc7   :  { %350 = vrsqrt.f32 %v234_v62  ;;  %vm251_vm12 = vcmp.eq.f32.partialorder %v233_v60, inf  ;;  %vm253_vm13 = vcmp.eq.f32.partialorder %v233_v60, 0.0  ;;  %v254_v42 = vand.u32 2147483648, %v233_v60 }
  0xc8   :  { %vm258_vm14 = vcmp.eq.f32.partialorder %v234_v62, inf  ;;  %v261_v43 = vand.u32 2147483648, %v234_v62  ;;  %vm260_vm15 = vcmp.eq.f32.partialorder %v234_v62, 0.0 }
  0xd1   :  { %v345_v55 = vpop.eup %344 }
  0xd2   :  { %v347_v4 = vpop.eup %346  ;;  %v236_v40 = vmul.f32 %v345_v55, %v231_v49 }
  0xd3   :  { %v349_v58 = vpop.eup %348  ;;  %v243_v41 = vmul.f32 %v347_v4, %v232_v56 }
  0xd4   :  { %v351_v61 = vpop.eup %350  ;;  %v238_v7 = vsel %vm237_vm8, %v231_v49, %v236_v40  ;;  %v250_v5 = vmul.f32 %v349_v58, %v233_v60 }
  0xd5   :  { %v241_v8 = vsel %vm239_vm9, %v240_v51, %v238_v7  ;;  %v245_v6 = vsel %vm244_vm10, %v232_v56, %v243_v41  ;;  %v257_v11 = vmul.f32 %v351_v61, %v234_v62 }
  0xd6   :  { %v248_v13 = vsel %vm246_vm11, %v247_v59, %v245_v6  ;;  %v252_v9 = vsel %vm251_vm12, %v233_v60, %v250_v5  ;;  %v271_v10 = vsel %vm47_vm0, %v241_v8, %v267_v63 }
  0xd7   :  { %v255_v12 = vsel %vm253_vm13, %v254_v42, %v252_v9  ;;  %v259_v14 = vsel %vm258_vm14, %v234_v62, %v257_v11  ;;  %v272_v15 = vsel %vm47_vm0, %v248_v13, %v268_v1  ;;  %275 = vst [vmem:[#allocation7] sm:$0xff] %v271_v10 }
  0xd8   :  { %v262_v16 = vsel %vm260_vm15, %v261_v43, %v259_v14  ;;  %v273_v17 = vsel %vm47_vm0, %v255_v12, %v269_v3  ;;  %276 = vst [vmem:[#allocation7 + $0x8] sm:$0xff] %v272_v15 }
  0xd9   :  { %v274_v18 = vsel %vm47_vm0, %v262_v16, %v270_v0  ;;  %277 = vst [vmem:[#allocation7 + $0x10] sm:$0xff] %v273_v17 }
  0xda   :  { %278 = vst [vmem:[#allocation7 + $0x18] sm:$0xff] %v274_v18 }
  0xdb   :  { %391 = shalt.err (!%p388_p9)
}
  0xdc   :  { %288 = dma.vmem_to_hbm [thread:$0]  %s286_s18, 512, %s561_s2, [#allocation4]  }
  0xdd   :  { %404 = dma.done.wait [#allocation4], 512  }
  0xde   :  { %405 = vsyncadd [#allocation4], 4294966784 }
  0xdf   :  { %292 = vsyncpa [#allocation3], 1 }
  0xe0   :  { %293 = vsyncpa [#allocation4], 1 }
  0xe1   :  { %294 = vsyncpa [#allocation5], 1 }

</bundles_post_ra>
